<compile_context>
chip_gen: v7x
topology: tpu7x:2x2x1
jax: 0.10.0
libtpu: 0.0.40
codegen_flags: <defaults>
</compile_context>

<pallas_src>
import functools

import jax
import jax.numpy as jnp
from jax.experimental import pallas as pl
from jax.experimental.pallas import tpu as pltpu

# bf16 operands + f32 accumulation: native MXU rate on v5e/v6e/v7x.
# Flip to jnp.float32 for bit-tight (1e-5) agreement with the f32 reference.
MATMUL_DTYPE = jnp.bfloat16


def _round_up(n: int, m: int) -> int:
    return ((n + m - 1) // m) * m


# ----------------------------- Pallas kernel ------------------------------ #
def _mlp_kernel(x_ref, *refs, n_layers: int, matmul_dtype):
    """Fused MLP for one batch tile.

    refs = [w0, b0, w1, b1, ..., w_{L-1}, b_{L-1}, o_ref]
    x_ref: (tm, D0p) f32      w_i: (D_ip, D_{i+1}p) matmul_dtype
    b_i:   (1, D_{i+1}p) f32  o_ref: (tm, D_Lp) f32
    All tiles lane-dense (feature dims padded to 128).
    """
    o_ref = refs[-1]
    wb = refs[:-1]

    x = x_ref[...]  # f32 activations stay on-chip across layers
    for i in range(n_layers):
        w = wb[2 * i][...]        # already matmul_dtype (pre-cast at init)
        b = wb[2 * i + 1][...]    # f32 bias
        y = jnp.dot(
            x.astype(matmul_dtype), w, preferred_element_type=jnp.float32
        )
        y = y + b                 # f32 epilogue (v5e VPU has no bf16 path)
        if i < n_layers - 1:
            y = jnp.maximum(y, 0.0)
        x = y
    o_ref[...] = x.astype(o_ref.dtype)


# ------------------------------ Dense module ------------------------------ #
def init_dense_params(key, in_dim, hlayers, out_dim, dtype=jnp.float32):
    """Deterministic parameter init mirroring nn.Linear's shapes.

    Returns a list of (W, b) with W of shape (in_features, out_features)."""
    params = []
    dims = [in_dim] + list(hlayers) + [out_dim]
    for i in range(len(dims) - 1):
        fan_in, fan_out = dims[i], dims[i + 1]
        key, kw, kb = jax.random.split(key, 3)
        bound = 1.0 / (fan_in ** 0.5)  # same bound PyTorch uses for Linear
        w = jax.random.uniform(kw, (fan_in, fan_out), dtype, -bound, bound)
        b = jax.random.uniform(kb, (fan_out,), dtype, -bound, bound)
        params.append((w, b))
    return params


def prepare_dense_params(params, matmul_dtype=MATMUL_DTYPE):
    """One-time prep: zero-pad feature dims to multiples of 128 and cast the
    weights to the matmul dtype.  Done once, NOT per forward call."""
    dims = [params[0][0].shape[0]] + [w.shape[1] for (w, _) in params]
    pdims = [_round_up(d, 128) for d in dims]

    padded = []
    for i, (w, b) in enumerate(params):
        wp = jnp.pad(
            w, ((0, pdims[i] - w.shape[0]), (0, pdims[i + 1] - w.shape[1]))
        ).astype(matmul_dtype)
        b2 = b.reshape(1, -1).astype(jnp.float32)
        bp = jnp.pad(b2, ((0, 0), (0, pdims[i + 1] - b2.shape[1])))
        padded += [wp, bp]
    return tuple(padded), tuple(dims), tuple(pdims)


def dense_forward(wb_padded, x, *, dims, pdims, matmul_dtype=MATMUL_DTYPE):
    """Forward pass: single fused Pallas kernel, batch-parallel grid."""
    B, in_dim = x.shape
    assert in_dim == dims[0]
    n_layers = len(dims) - 1

    # Batch padding: 16-row sublane packing for bf16 operands, 8 for f32.
    sub = 16 if jnp.dtype(matmul_dtype).itemsize < 4 else 8
    bp0 = _round_up(B, sub)
    tm = min(bp0, 128)            # moderate tile: live f32 acts stay in vregs
    Bp = _round_up(bp0, tm)

    # Only x is padded per call (weights were padded once at init).
    xp = jnp.pad(x, ((0, Bp - B), (0, pdims[0] - in_dim)))

    # Advisory cost for XLA's scheduler, on TRUE (unpadded) dims.
    flops = sum(2 * B * dims[i] * dims[i + 1] for i in range(n_layers))
    bytes_accessed = (
        B * dims[0] * 4
        + sum(int(a.size) * a.dtype.itemsize for a in wb_padded)
        + B * dims[-1] * 4
    )

    # VMEM budget: 2x-buffered operands + output tile + live activation tile.
    wsz = jnp.dtype(matmul_dtype).itemsize
    wb_bytes = sum(
        pdims[i] * pdims[i + 1] * wsz + pdims[i + 1] * 4
        for i in range(n_layers)
    )
    act_bytes = 2 * tm * (pdims[0] + pdims[-1] + max(pdims)) * 4
    needed = 2 * wb_bytes + act_bytes
    # >= 32 MiB (raises v5e's 16 MiB scoped default), <= 64 MiB (v7x physical).
    vmem_limit = int(min(max(needed + (4 << 20), 32 << 20), 64 << 20))

    # BlockSpecs: x/out tiled over batch; weights/biases whole-array resident
    # (constant index_map => fetched once, no re-DMA across grid steps).
    in_specs = [pl.BlockSpec((tm, pdims[0]), lambda i: (i, 0))]
    for li in range(n_layers):
        in_specs.append(
            pl.BlockSpec((pdims[li], pdims[li + 1]), lambda i: (0, 0))
        )
        in_specs.append(pl.BlockSpec((1, pdims[li + 1]), lambda i: (0, 0)))
    out_specs = pl.BlockSpec((tm, pdims[-1]), lambda i: (i, 0))

    kernel = functools.partial(
        _mlp_kernel, n_layers=n_layers, matmul_dtype=matmul_dtype
    )
    out_p = pl.pallas_call(
        kernel,
        out_shape=jax.ShapeDtypeStruct((Bp, pdims[-1]), x.dtype),
        grid=(Bp // tm,),
        in_specs=in_specs,
        out_specs=out_specs,
        compiler_params=pltpu.CompilerParams(
            dimension_semantics=("parallel",),   # shard batch tiles over TCs (v7x)
            vmem_limit_bytes=vmem_limit,
        ),
        cost_estimate=pl.CostEstimate(
            flops=flops, transcendentals=0, bytes_accessed=bytes_accessed
        ),
    )(xp, *wb_padded)

    # Slice the batch/lane padding back off.
    return out_p[:B, : dims[-1]]


def dense_forward_ref(params, x):
    """Pure-JAX f32 reference for correctness check."""
    n = len(params)
    for i, (w, b) in enumerate(params):
        x = x @ w + b
        if i < n - 1:
            x = jnp.maximum(x, 0.0)
    return x


# --------------------------------- Main ------------------------------------ #
if __name__ == "__main__":
    key = jax.random.PRNGKey(0)

    batch = 8
    in_dim = 32
    hlayers = [64, 32]
    out_dim = 16

    kx, kp = jax.random.split(key)
    x = jax.random.normal(kx, (batch, in_dim), jnp.float32)
    params = init_dense_params(kp, in_dim, hlayers, out_dim)

    # One-time prep: pad + cast weights (kept across all forward calls).
    wb_padded, dims, pdims = prepare_dense_params(params, MATMUL_DTYPE)

    fwd = jax.jit(
        functools.partial(
            dense_forward, dims=dims, pdims=pdims, matmul_dtype=MATMUL_DTYPE
        )
    )
    out = jax.block_until_ready(fwd(wb_padded, x))

    ref = dense_forward_ref(params, x)
    assert out.shape == (batch, out_dim)
    # bf16 operands + f32 accumulation: expect ~1e-3 abs error; f32 is 1e-5.
    tol = 1e-5 if MATMUL_DTYPE == jnp.float32 else 5e-2
    assert jnp.allclose(out, ref, atol=tol, rtol=tol), "mismatch vs reference"

    print("KERNEL_OK")
</pallas_src>

<mosaic_0001>
module attributes {stable_mosaic.version = 11 : i64} {
  func.func @_mlp_kernel(%arg0: i32, %arg1: memref<16x128xf32, #tpu.memory_space<vmem>>, %arg2: memref<128x128xbf16, #tpu.memory_space<vmem>>, %arg3: memref<1x128xf32, #tpu.memory_space<vmem>>, %arg4: memref<128x128xbf16, #tpu.memory_space<vmem>>, %arg5: memref<1x128xf32, #tpu.memory_space<vmem>>, %arg6: memref<128x128xbf16, #tpu.memory_space<vmem>>, %arg7: memref<1x128xf32, #tpu.memory_space<vmem>>, %arg8: memref<16x128xf32, #tpu.memory_space<vmem>>) attributes {dimension_semantics = [#tpu.dimension_semantics<parallel>], iteration_bounds = array<i64: 1>, scalar_prefetch = 0 : i64, scratch_operands = 0 : i64, tpu.core_type = #tpu.core_type<tc>, window_params = [{transform_indices = @transform_0, window_bounds = array<i64: 16, 128>}, {pipeline_mode = #tpu.pipeline_mode<synchronous>, transform_indices = @transform_1, window_bounds = array<i64: 128, 128>}, {pipeline_mode = #tpu.pipeline_mode<synchronous>, transform_indices = @transform_2, window_bounds = array<i64: 1, 128>}, {pipeline_mode = #tpu.pipeline_mode<synchronous>, transform_indices = @transform_3, window_bounds = array<i64: 128, 128>}, {pipeline_mode = #tpu.pipeline_mode<synchronous>, transform_indices = @transform_4, window_bounds = array<i64: 1, 128>}, {pipeline_mode = #tpu.pipeline_mode<synchronous>, transform_indices = @transform_5, window_bounds = array<i64: 128, 128>}, {pipeline_mode = #tpu.pipeline_mode<synchronous>, transform_indices = @transform_6, window_bounds = array<i64: 1, 128>}, {transform_indices = @transform_7, window_bounds = array<i64: 16, 128>}]} {
    %c0 = arith.constant 0 : index
    %c0_0 = arith.constant 0 : index
    %0 = vector.load %arg1[%c0, %c0_0] : memref<16x128xf32, #tpu.memory_space<vmem>>, vector<16x128xf32>
    %c0_1 = arith.constant 0 : index
    %c0_2 = arith.constant 0 : index
    %1 = vector.load %arg2[%c0_1, %c0_2] : memref<128x128xbf16, #tpu.memory_space<vmem>>, vector<128x128xbf16>
    %c0_3 = arith.constant 0 : index
    %c0_4 = arith.constant 0 : index
    %2 = vector.load %arg3[%c0_3, %c0_4] : memref<1x128xf32, #tpu.memory_space<vmem>>, vector<1x128xf32>
    %3 = arith.truncf %0 : vector<16x128xf32> to vector<16x128xbf16>
    %cst = arith.constant dense<0.000000e+00> : vector<16x128xf32>
    %4 = tpu.matmul %3, %1, %cst {dimension_numbers = #tpu.dot_dimension_numbers<[1], [0], [0], [1], [0, 0, 1, 1], [], []>} : vector<16x128xbf16>, vector<128x128xbf16>, vector<16x128xf32> -> vector<16x128xf32>
    %5 = vector.broadcast %2 : vector<1x128xf32> to vector<16x128xf32>
    %6 = arith.addf %4, %5 : vector<16x128xf32>
    %cst_5 = arith.constant 0.000000e+00 : f32
    %7 = vector.broadcast %cst_5 : f32 to vector<16x128xf32>
    %8 = arith.maximumf %6, %7 : vector<16x128xf32>
    %c0_6 = arith.constant 0 : index
    %c0_7 = arith.constant 0 : index
    %9 = vector.load %arg4[%c0_6, %c0_7] : memref<128x128xbf16, #tpu.memory_space<vmem>>, vector<128x128xbf16>
    %c0_8 = arith.constant 0 : index
    %c0_9 = arith.constant 0 : index
    %10 = vector.load %arg5[%c0_8, %c0_9] : memref<1x128xf32, #tpu.memory_space<vmem>>, vector<1x128xf32>
    %11 = arith.truncf %8 : vector<16x128xf32> to vector<16x128xbf16>
    %cst_10 = arith.constant dense<0.000000e+00> : vector<16x128xf32>
    %12 = tpu.matmul %11, %9, %cst_10 {dimension_numbers = #tpu.dot_dimension_numbers<[1], [0], [0], [1], [0, 0, 1, 1], [], []>} : vector<16x128xbf16>, vector<128x128xbf16>, vector<16x128xf32> -> vector<16x128xf32>
    %13 = vector.broadcast %10 : vector<1x128xf32> to vector<16x128xf32>
    %14 = arith.addf %12, %13 : vector<16x128xf32>
    %cst_11 = arith.constant 0.000000e+00 : f32
    %15 = vector.broadcast %cst_11 : f32 to vector<16x128xf32>
    %16 = arith.maximumf %14, %15 : vector<16x128xf32>
    %c0_12 = arith.constant 0 : index
    %c0_13 = arith.constant 0 : index
    %17 = vector.load %arg6[%c0_12, %c0_13] : memref<128x128xbf16, #tpu.memory_space<vmem>>, vector<128x128xbf16>
    %c0_14 = arith.constant 0 : index
    %c0_15 = arith.constant 0 : index
    %18 = vector.load %arg7[%c0_14, %c0_15] : memref<1x128xf32, #tpu.memory_space<vmem>>, vector<1x128xf32>
    %19 = arith.truncf %16 : vector<16x128xf32> to vector<16x128xbf16>
    %cst_16 = arith.constant dense<0.000000e+00> : vector<16x128xf32>
    %20 = tpu.matmul %19, %17, %cst_16 {dimension_numbers = #tpu.dot_dimension_numbers<[1], [0], [0], [1], [0, 0, 1, 1], [], []>} : vector<16x128xbf16>, vector<128x128xbf16>, vector<16x128xf32> -> vector<16x128xf32>
    %21 = vector.broadcast %18 : vector<1x128xf32> to vector<16x128xf32>
    %22 = arith.addf %20, %21 : vector<16x128xf32>
    %c0_17 = arith.constant 0 : index
    %c0_18 = arith.constant 0 : index
    %23 = vector.load %arg8[%c0_17, %c0_18] : memref<16x128xf32, #tpu.memory_space<vmem>>, vector<16x128xf32>
    tpu.vector_store %arg8[%c0_17, %c0_18], %22 {strides = array<i32>} : memref<16x128xf32, #tpu.memory_space<vmem>>, vector<16x128xf32>,
    return
  }
  func.func @transform_0(%arg0: i32) -> (i32, i32) {
    %c0_i32 = arith.constant 0 : i32
    %c0_i32_0 = arith.constant 0 : i32
    return %arg0, %c0_i32 : i32, i32
  }
  func.func @transform_1(%arg0: i32) -> (i32, i32) {
    %c0_i32 = arith.constant 0 : i32
    %c0_i32_0 = arith.constant 0 : i32
    %c0_i32_1 = arith.constant 0 : i32
    return %c0_i32, %c0_i32_0 : i32, i32
  }
  func.func @transform_2(%arg0: i32) -> (i32, i32) {
    %c0_i32 = arith.constant 0 : i32
    %c0_i32_0 = arith.constant 0 : i32
    %c0_i32_1 = arith.constant 0 : i32
    return %c0_i32, %c0_i32_0 : i32, i32
  }
  func.func @transform_3(%arg0: i32) -> (i32, i32) {
    %c0_i32 = arith.constant 0 : i32
    %c0_i32_0 = arith.constant 0 : i32
    %c0_i32_1 = arith.constant 0 : i32
    return %c0_i32, %c0_i32_0 : i32, i32
  }
  func.func @transform_4(%arg0: i32) -> (i32, i32) {
    %c0_i32 = arith.constant 0 : i32
    %c0_i32_0 = arith.constant 0 : i32
    %c0_i32_1 = arith.constant 0 : i32
    return %c0_i32, %c0_i32_0 : i32, i32
  }
  func.func @transform_5(%arg0: i32) -> (i32, i32) {
    %c0_i32 = arith.constant 0 : i32
    %c0_i32_0 = arith.constant 0 : i32
    %c0_i32_1 = arith.constant 0 : i32
    return %c0_i32, %c0_i32_0 : i32, i32
  }
  func.func @transform_6(%arg0: i32) -> (i32, i32) {
    %c0_i32 = arith.constant 0 : i32
    %c0_i32_0 = arith.constant 0 : i32
    %c0_i32_1 = arith.constant 0 : i32
    return %c0_i32, %c0_i32_0 : i32, i32
  }
  func.func @transform_7(%arg0: i32) -> (i32, i32) {
    %c0_i32 = arith.constant 0 : i32
    %c0_i32_0 = arith.constant 0 : i32
    return %arg0, %c0_i32 : i32, i32
  }
}

</mosaic_0001>

<bundles_post_ra>
// kernel: dense_forward.1
= control target key start
LH: loop header
LB: loop body
LE: loop exit
PB: predicated region body
PF: predicated region fallthrough
CT: control target
= control target key end

     0   :  { %12 = vsyncpa [#allocation3], 0  ;;  %s786_s0 = inlined_call_operand.vmem [shape: f32[16,128], index: 0, kind: input, shape index: {}]   ;;  %s787_s1 = inlined_call_operand.hbm [shape: bf16[128,128], index: 1, kind: input, shape index: {}]   ;;  %s788_s2 = inlined_call_operand.vmem [shape: f32[1,128], index: 2, kind: input, shape index: {}]   ;;  %s789_s3 = inlined_call_operand.hbm [shape: bf16[128,128], index: 3, kind: input, shape index: {}]   ;;  %s790_s4 = inlined_call_operand.vmem [shape: f32[1,128], index: 4, kind: input, shape index: {}]   ;;  %s791_s5 = inlined_call_operand.hbm [shape: bf16[128,128], index: 5, kind: input, shape index: {}]   ;;  %s792_s6 = inlined_call_operand.vmem [shape: f32[1,128], index: 6, kind: input, shape index: {}]   ;;  %s793_s7 = inlined_call_operand.vmem [shape: f32[16,128], index: 7, kind: output, shape index: {}]  }
   0x1   :  { %13 = vsyncpa [#allocation5], 0  ;;  %s636_s24 = smov [#allocation4]   ;;  %s637_s26 = smov [#allocation2]  }
   0x2   :  { %s35_s25 = sshll.u32 %s636_s24, 4  ;;  %s21_s27 = sshll.u32 %s637_s26, 4  ;;  %s36_s25 = int_to_ptr.vmem [resolvable:$true] %s35_s25  ;;  %s683_s27 = int_to_ptr.vmem [resolvable:$true] %s21_s27 }
   0x3   :  { %s566_s30 = scalar_lea.hbm %s789_s3, 1024 }
   0x4   :  { %p567_p0 = scmp.ne.s32.totalorder %s789_s3, %s566_s30  ;;  %p570_p1 = scmp.lt.u32.totalorder %s566_s30, %s789_s3 }
   0x6   :  { %p572_p2 = pnand %p570_p1, %p567_p0 }
   0x8   :  { %575 = shalt.err (!%p572_p2)
}
   0x9   :  { %s576_s12 = scalar_lea.vmem %s36_s25, 1024  ;;  %p581_p4 = scmp.lt.s32.totalorder %s36_s25, %s36_s25 }
   0xa   :  { %p577_p3 = scmp.ne.s32.totalorder %s36_s25, %s576_s12  ;;  %p582_p5 = scmp.lt.s32.totalorder %s576_s12, %s576_s12 }
   0xc   :  { %p583_p6 = por %p582_p5, %p581_p4 }
   0xe   :  { %p584_p7 = pnand %p583_p6, %p577_p3 }
  0x10   :  { %587 = shalt.err (!%p584_p7)
}
  0x11   :  { %s638_s13 = smov 64   ;;  %s639_s14 = smov 4  }
  0x12   :  { %41 = dma.hbm_to_vmem [thread:$0]  %s789_s3, 1024, %s36_s25, [#allocation5], %s638_s13, %s638_s13, %s639_s14  }
  0x13   :  { %s588_s19 = scalar_lea.hbm %s787_s1, 1024 }
  0x14   :  { %p589_p8 = scmp.ne.s32.totalorder %s787_s1, %s588_s19  ;;  %p592_p9 = scmp.lt.u32.totalorder %s588_s19, %s787_s1 }
  0x16   :  { %p594_p10 = pnand %p592_p9, %p589_p8 }
  0x18   :  { %597 = shalt.err (!%p594_p10)
}
  0x19   :  { %s598_s24 = scalar_lea.vmem %s683_s27, 1024  ;;  %p603_p12 = scmp.lt.s32.totalorder %s683_s27, %s683_s27 }
  0x1a   :  { %p599_p11 = scmp.ne.s32.totalorder %s683_s27, %s598_s24  ;;  %p604_p13 = scmp.lt.s32.totalorder %s598_s24, %s598_s24 }
  0x1c   :  { %p605_p0 = por %p604_p13, %p603_p12 }
  0x1e   :  { %p606_p1 = pnand %p605_p0, %p599_p11 }
  0x20   :  { %609 = shalt.err (!%p606_p1)
}
  0x21   :  { %27 = dma.hbm_to_vmem [thread:$0]  %s787_s1, 1024, %s683_s27, [#allocation3], %s638_s13, %s638_s13, %s639_s14  }
  0x22   :  { %s640_s26 = smov [#allocation6]   ;;  %s610_s8 = scalar_lea.hbm %s791_s5, 1024 }
  0x23   :  { %s49_s28 = sshll.u32 %s640_s26, 4  ;;  %p611_p2 = scmp.ne.s32.totalorder %s791_s5, %s610_s8  ;;  %s50_s28 = int_to_ptr.vmem [resolvable:$true] %s49_s28 }
  0x24   :  { %p614_p3 = scmp.lt.u32.totalorder %s610_s8, %s791_s5 }
  0x26   :  { %p616_p4 = pnand %p614_p3, %p611_p2 }
  0x28   :  { %619 = shalt.err (!%p616_p4)
}
  0x29   :  { %s620_s15 = scalar_lea.vmem %s50_s28, 1024  ;;  %p625_p6 = scmp.lt.s32.totalorder %s50_s28, %s50_s28 }
  0x2a   :  { %p621_p5 = scmp.ne.s32.totalorder %s50_s28, %s620_s15  ;;  %p626_p7 = scmp.lt.s32.totalorder %s620_s15, %s620_s15 }
  0x2c   :  { %p627_p8 = por %p626_p7, %p625_p6 }
  0x2e   :  { %p628_p9 = pnand %p627_p8, %p621_p5 }
  0x30   :  { %631 = shalt.err (!%p628_p9)
}
  0x31   :  { %55 = dma.hbm_to_vmem [thread:$0]  %s791_s5, 1024, %s50_s28, [#allocation5], %s638_s13, %s638_s13, %s639_s14  }
  0x32   :  { %632 = dma.done.wait [#allocation3], 1024  }
  0x33   :  { %633 = vsyncadd [#allocation3], 4294966272 }
  0x34   :  { %634 = dma.done.wait [#allocation5], 2048  }
  0x35   :  { %635 = vsyncadd [#allocation5], 4294965248  ;;  %v641_v0 = vmov 0.0   ;;  %vm642_vm0 = vmmov 0   ;;  %v542_v1 = vld [vmem:[#allocation2] sm:$0xff]   ;;  %v543_v2 = vld [vmem:[#allocation2 + $0x8] sm:$0xff]  }
  0x36   :  { %475 = vmatprep.subr.bf16.mxu0 %v641_v0  ;;  %491 = vmatprep.mubr.msk.bf16.mxu0 %vm642_vm0, %v641_v0  ;;  %v544_v3 = vld [vmem:[#allocation2 + $0x10] sm:$0xff]   ;;  %v550_v4 = vld [vmem:[#allocation4] sm:$0xff]   ;;  %v545_v5 = vld [vmem:[#allocation2 + $0x18] sm:$0xff]  }
  0x37   :  { %495 = vmatprep.subr.bf16.mxu1 %v641_v0  ;;  %511 = vmatprep.mubr.msk.bf16.mxu1 %vm642_vm0, %v641_v0  ;;  %v551_v6 = vld [vmem:[#allocation4 + $0x8] sm:$0xff]   ;;  %v546_v7 = vld [vmem:[#allocation2 + $0x20] sm:$0xff]   ;;  %v552_v8 = vld [vmem:[#allocation4 + $0x10] sm:$0xff]  }
  0x38   :  { %476 = vmatpush3.bf16.msra.mxu0 %v542_v1  ;;  %496 = vmatpush3.bf16.msra.mxu1 %v550_v4  ;;  %v547_v9 = vld [vmem:[#allocation2 + $0x28] sm:$0xff]   ;;  %v553_v10 = vld [vmem:[#allocation4 + $0x18] sm:$0xff]   ;;  %v548_v11 = vld [vmem:[#allocation2 + $0x30] sm:$0xff]  }
  0x39   :  { %477 = vmatprep.subr.bf16.mxu0 %v641_v0  ;;  %497 = vmatprep.subr.bf16.mxu1 %v641_v0  ;;  %v554_v12 = vld [vmem:[#allocation4 + $0x20] sm:$0xff]   ;;  %v549_v13 = vld [vmem:[#allocation2 + $0x38] sm:$0xff]   ;;  %v69_v15 = vld [vmem:[%s786_s0 + $0x8] sm:$0xff] }
  0x3a   :  { %v68_v14 = vld [vmem:[%s786_s0] sm:$0xff]  ;;  %v555_v16 = vld [vmem:[#allocation4 + $0x28] sm:$0xff]   ;;  %v556_v18 = vld [vmem:[#allocation4 + $0x30] sm:$0xff]  }
  0x3b   :  { %v87_v17 = vpack.c.bf16 %v69_v15, %v68_v14  ;;  %v557_v19 = vld [vmem:[#allocation4 + $0x38] sm:$0xff]   ;;  %v558_v20 = vld [vmem:[#allocation6] sm:$0xff]   ;;  %v559_v21 = vld [vmem:[#allocation6 + $0x8] sm:$0xff]  }
  0x3c   :  { %478 = vmatpush3.bf16.msra.mxu0 %v543_v2  ;;  %498 = vmatpush3.bf16.msra.mxu1 %v551_v6  ;;  %v560_v22 = vld [vmem:[#allocation6 + $0x10] sm:$0xff]   ;;  %v561_v23 = vld [vmem:[#allocation6 + $0x18] sm:$0xff]   ;;  %v562_v24 = vld [vmem:[#allocation6 + $0x20] sm:$0xff]  }
  0x3d   :  { %479 = vmatprep.subr.bf16.mxu0 %v641_v0  ;;  %499 = vmatprep.subr.bf16.mxu1 %v641_v0  ;;  %v563_v25 = vld [vmem:[#allocation6 + $0x28] sm:$0xff]   ;;  %v421_v26 = vld [vmem:[%s788_s2] ss:$0 sm:$0xff]  ;;  %v564_v36 = vld [vmem:[#allocation6 + $0x30] sm:$0xff]  }
  0x3e   :  { %v565_v37 = vld [vmem:[#allocation6 + $0x38] sm:$0xff]   ;;  %v430_v38 = vld [vmem:[%s790_s4] ss:$0 sm:$0xff] }
  0x3f   :  { %v439_v48 = vld [vmem:[%s792_s6] ss:$0 sm:$0xff] }
  0x40   :  { %480 = vmatpush3.bf16.msra.mxu0 %v544_v3  ;;  %500 = vmatpush3.bf16.msra.mxu1 %v552_v8 }
  0x41   :  { %481 = vmatprep.subr.bf16.mxu0 %v641_v0  ;;  %501 = vmatprep.subr.bf16.mxu1 %v641_v0 }
  0x44   :  { %482 = vmatpush3.bf16.msra.mxu0 %v545_v5  ;;  %502 = vmatpush3.bf16.msra.mxu1 %v553_v10 }
  0x45   :  { %483 = vmatprep.subr.bf16.mxu0 %v641_v0  ;;  %503 = vmatprep.subr.bf16.mxu1 %v641_v0 }
  0x48   :  { %484 = vmatpush3.bf16.msra.mxu0 %v546_v7  ;;  %504 = vmatpush3.bf16.msra.mxu1 %v554_v12 }
  0x49   :  { %485 = vmatprep.subr.bf16.mxu0 %v641_v0  ;;  %505 = vmatprep.subr.bf16.mxu1 %v641_v0 }
  0x4c   :  { %486 = vmatpush3.bf16.msra.mxu0 %v547_v9  ;;  %506 = vmatpush3.bf16.msra.mxu1 %v555_v16 }
  0x4d   :  { %487 = vmatprep.subr.bf16.mxu0 %v641_v0  ;;  %507 = vmatprep.subr.bf16.mxu1 %v641_v0 }
  0x50   :  { %488 = vmatpush3.bf16.msra.mxu0 %v548_v11  ;;  %508 = vmatpush3.bf16.msra.mxu1 %v556_v18 }
  0x51   :  { %489 = vmatprep.subr.bf16.mxu0 %v641_v0  ;;  %509 = vmatprep.subr.bf16.mxu1 %v641_v0 }
  0x54   :  { %490 = vmatpush3.bf16.msra.mxu0 %v549_v13  ;;  %510 = vmatpush3.bf16.msra.mxu1 %v557_v19 }
  0x55   :  { %515 = vmatprep.subr.bf16.mxu0 %v641_v0 }
  0x57   :  { %492 = vmatmul.mubr.bf16.vlgmr.msra.gmra.mrb[0].mxu0 %v87_v17 }
  0x58   :  { %531 = vmatprep.mubr.msk.bf16.mxu0 %vm642_vm0, %v641_v0  ;;  %516 = vmatpush3.bf16.msra.mxu0 %v558_v20 }
  0x59   :  { %517 = vmatprep.subr.bf16.mxu0 %v641_v0 }
  0x5c   :  { %518 = vmatpush3.bf16.msra.mxu0 %v559_v21 }
  0x5d   :  { %519 = vmatprep.subr.bf16.mxu0 %v641_v0 }
  0x60   :  { %520 = vmatpush3.bf16.msra.mxu0 %v560_v22 }
  0x61   :  { %521 = vmatprep.subr.bf16.mxu0 %v641_v0 }
  0x64   :  { %522 = vmatpush3.bf16.msra.mxu0 %v561_v23 }
  0x65   :  { %523 = vmatprep.subr.bf16.mxu0 %v641_v0 }
  0x68   :  { %524 = vmatpush3.bf16.msra.mxu0 %v562_v24 }
  0x69   :  { %525 = vmatprep.subr.bf16.mxu0 %v641_v0 }
  0x6c   :  { %526 = vmatpush3.bf16.msra.mxu0 %v563_v25 }
  0x6d   :  { %527 = vmatprep.subr.bf16.mxu0 %v641_v0 }
  0x70   :  { %528 = vmatpush3.bf16.msra.mxu0 %v564_v36 }
  0x71   :  { %529 = vmatprep.subr.bf16.mxu0 %v641_v0 }
  0x74   :  { %530 = vmatpush3.bf16.msra.mxu0 %v565_v37 }
 0x12a   :  { %v176_v27 = vpop.f32.mrb[0].mxu0 }
 0x12b   :  { %v177_v28 = vadd.f32 %v421_v26, %v176_v27  ;;  %v493_v29 = vpop.f32.mrb[1].mxu0 }
 0x12c   :  { %v179_v30 = vpop.f32.mrb[2].mxu0 }
 0x12d   :  { %v180_v31 = vadd.f32 %v421_v26, %v179_v30  ;;  %v494_v32 = vpop.f32.mrb[3].mxu0  ;;  %v183_v33 = vmax.f32 %v177_v28, 0.0 }
 0x12f   :  { %v184_v34 = vmax.f32 %v180_v31, 0.0 }
 0x131   :  { %v202_v35 = vpack.c.bf16 %v184_v34, %v183_v33 }
 0x133   :  { %512 = vmatmul.mubr.bf16.vlgmr.msra.gmra.mrb[0].mxu1 %v202_v35 }
 0x206   :  { %v291_v39 = vpop.f32.mrb[0].mxu1 }
 0x207   :  { %v292_v40 = vadd.f32 %v430_v38, %v291_v39  ;;  %v513_v41 = vpop.f32.mrb[1].mxu1 }
 0x208   :  { %v294_v42 = vpop.f32.mrb[2].mxu1 }
 0x209   :  { %v295_v43 = vadd.f32 %v430_v38, %v294_v42  ;;  %v514_v44 = vpop.f32.mrb[3].mxu1  ;;  %v298_v45 = vmax.f32 %v292_v40, 0.0 }
 0x20b   :  { %v299_v46 = vmax.f32 %v295_v43, 0.0 }
 0x20d   :  { %v317_v47 = vpack.c.bf16 %v299_v46, %v298_v45 }
 0x20f   :  { %532 = vmatmul.mubr.bf16.vlgmr.msra.gmra.mrb[4].mxu0 %v317_v47 }
 0x2e2   :  { %v406_v49 = vpop.f32.mrb[4].mxu0 }
 0x2e3   :  { %v407_v50 = vadd.f32 %v439_v48, %v406_v49  ;;  %v533_v51 = vpop.f32.mrb[5].mxu0 }
 0x2e4   :  { %v409_v52 = vpop.f32.mrb[6].mxu0 }
 0x2e5   :  { %413 = vst [vmem:[%s793_s7] sm:$0xff] %v407_v50  ;;  %v410_v53 = vadd.f32 %v439_v48, %v409_v52  ;;  %v534_v54 = vpop.f32.mrb[7].mxu0 }
 0x2e7   :  { %414 = vst [vmem:[%s793_s7 + $0x8] sm:$0xff] %v410_v53 }
 0x2e8   :  { %419 = vsyncpa [#allocation3], 1 }
 0x2e9   :  { %420 = vsyncpa [#allocation5], 1 }

</bundles_post_ra>
